<compile_context>
chip_gen: v7x
topology: tpu7x:2x2x1
jax: 0.10.0
libtpu: 0.0.40
codegen_flags: <defaults>
</compile_context>

<pallas_src>
import functools

import jax
import jax.numpy as jnp
from jax.experimental import pallas as pl
from jax.experimental.pallas import tpu as pltpu


def hybrid_fusion_kernel(visual_ref, audio_ref, w_early_ref, b_early_ref,
                         w_late_ref, w2_ref, b_out_ref, out_ref, *, dv):
    # dv is a static Python int -> row slices of the weight refs are free views
    # (sublane-axis splits, 8-aligned for the shapes used here).
    v = visual_ref[...]
    a = audio_ref[...]

    # Early-fusion Linear: cat(v,a) @ W1 == v @ W1[:dv] + a @ W1[dv:]
    h = (jnp.dot(v, w_early_ref[:dv, :], preferred_element_type=jnp.float32)
         + jnp.dot(a, w_early_ref[dv:, :], preferred_element_type=jnp.float32)
         + b_early_ref[...])
    h = jnp.maximum(h, 0.0)               # ReLU; BN scale/shift folded into w2/b_out

    # Late-fusion classifiers (0.4*sigmoid(fw) / 0.4*(1-sigmoid(fw)) pre-folded
    # into the weight rows; biases folded into b_out).
    late = (jnp.dot(v, w_late_ref[:dv, :], preferred_element_type=jnp.float32)
            + jnp.dot(a, w_late_ref[dv:, :], preferred_element_type=jnp.float32))

    # TODO(synk): nn.Dropout is stochastic in training; implemented as
    # inference-mode identity here.
    out_ref[...] = (jnp.dot(h, w2_ref[...], preferred_element_type=jnp.float32)
                    + late + b_out_ref[...])


def prepare_params(params, eps=1e-5):
    """One-time offline folding of BatchNorm, sigmoid blend and 0.6/0.4 scales."""
    fw = jax.nn.sigmoid(params["fusion_w"][0])
    cw = 0.4 * fw
    ca = 0.4 * (1.0 - fw)

    # BatchNorm (after ReLU) is an affine per-channel transform feeding w2:
    #   h_bn = h*scale + shift  ->  h @ (scale[:,None]*w2) + (shift@w2)
    scale = params["gamma"] * jax.lax.rsqrt(params["rvar"] + eps)   # (1, H)
    shift = params["beta"] - params["rmean"] * scale                # (1, H)
    w2f = 0.6 * (scale.reshape(-1, 1) * params["w2"])               # (H, O)
    b2f = 0.6 * (shift @ params["w2"] + params["b2"])               # (1, O)

    # Row-stacked early weights (split by rows inside the kernel — no lane concat).
    w_early = jnp.concatenate([params["w1v"], params["w1a"]], axis=0)   # (Dv+Da, H)
    # Row-stacked late weights with blend coefficients folded in.
    w_late = jnp.concatenate([cw * params["wv"], ca * params["wa"]], axis=0)  # (Dv+Da, O)
    # All output-side bias terms folded into one vector.
    b_out = b2f + cw * params["bv"] + ca * params["ba"]                 # (1, O)

    return {"w_early": w_early, "b_early": params["b1"],
            "w_late": w_late, "w2": w2f, "b_out": b_out}


def hybrid_fusion(visual, audio, prepared, *, tile_b=2048):
    B, Dv = visual.shape
    Da = audio.shape[1]
    w_early, b_early = prepared["w_early"], prepared["b_early"]
    w_late, w2, b_out = prepared["w_late"], prepared["w2"], prepared["b_out"]
    Dcat, H = w_early.shape
    O = w2.shape[1]

    # Batch tile selection:
    #  * tiny batches: single full-array block (TB == B satisfies the tiling rule),
    #  * otherwise 8-aligned tiles, capped so the grid has >= 2 steps — keeps both
    #    TensorCores busy on v7x via dimension_semantics=("parallel",).
    if B <= 16:
        TB = B
    else:
        half = -(-B // 2)                       # ceil(B / 2)
        TB = min(tile_b, -(-half // 8) * 8)     # round up to multiple of 8

    grid = (pl.cdiv(B, TB),)                    # ragged last block handled by Pallas

    flops = 2 * B * (Dcat * (H + O) + H * O)
    bytes_accessed = 4 * (B * (Dv + Da + O) + Dcat * (H + O) + H * O + H + O)

    kernel = functools.partial(hybrid_fusion_kernel, dv=Dv)

    out = pl.pallas_call(
        kernel,
        out_shape=jax.ShapeDtypeStruct((B, O), jnp.float32),
        grid=grid,
        in_specs=[
            pl.BlockSpec((TB, Dv), lambda i: (i, 0)),     # visual tile
            pl.BlockSpec((TB, Da), lambda i: (i, 0)),     # audio tile
            pl.BlockSpec((Dcat, H), lambda i: (0, 0)),    # early weights (row-stacked)
            pl.BlockSpec((1, H), lambda i: (0, 0)),       # early bias
            pl.BlockSpec((Dcat, O), lambda i: (0, 0)),    # late weights (blend folded)
            pl.BlockSpec((H, O), lambda i: (0, 0)),       # BN-folded w2
            pl.BlockSpec((1, O), lambda i: (0, 0)),       # folded output bias
        ],
        out_specs=pl.BlockSpec((TB, O), lambda i: (i, 0)),
        compiler_params=pltpu.CompilerParams(
            dimension_semantics=("parallel",)),
        cost_estimate=pl.CostEstimate(
            flops=flops, transcendentals=0, bytes_accessed=bytes_accessed),
    )(visual, audio, w_early, b_early, w_late, w2, b_out)

    return out


def _reference(visual, audio, p):
    h = visual @ p["w1v"] + audio @ p["w1a"] + p["b1"]
    h = jnp.maximum(h, 0.0)
    scale = p["gamma"] / jnp.sqrt(p["rvar"] + 1e-5)
    h = (h - p["rmean"]) * scale + p["beta"]
    early = h @ p["w2"] + p["b2"]
    v_out = visual @ p["wv"] + p["bv"]
    a_out = audio @ p["wa"] + p["ba"]
    fw = jax.nn.sigmoid(p["fusion_w"][0])
    late = fw * v_out + (1.0 - fw) * a_out
    return 0.6 * early + 0.4 * late


if __name__ == "__main__":
    B, Dv, Da, H, O = 8, 16, 24, 32, 21

    key = jax.random.PRNGKey(0)
    keys = jax.random.split(key, 16)

    def rnd(k, shape, s=0.1):
        return jax.random.normal(k, shape, dtype=jnp.float32) * s

    visual = rnd(keys[0], (B, Dv), 1.0)
    audio = rnd(keys[1], (B, Da), 1.0)

    params = {
        # early fusion MLP (Linear(Dv+Da, H) split into visual / audio halves)
        "w1v": rnd(keys[2], (Dv, H)),
        "w1a": rnd(keys[3], (Da, H)),
        "b1": rnd(keys[4], (1, H)),
        # BatchNorm1d(H) affine + running stats (deterministic, non-trivial)
        "gamma": 1.0 + rnd(keys[5], (1, H)),
        "beta": rnd(keys[6], (1, H)),
        "rmean": rnd(keys[7], (1, H)),
        "rvar": 1.0 + jnp.abs(rnd(keys[8], (1, H))),
        # Linear(H, O)
        "w2": rnd(keys[9], (H, O)),
        "b2": rnd(keys[10], (1, O)),
        # late fusion classifiers
        "wv": rnd(keys[11], (Dv, O)),
        "bv": rnd(keys[12], (1, O)),
        "wa": rnd(keys[13], (Da, O)),
        "ba": rnd(keys[14], (1, O)),
        # scalar fusion weight parameter (init 0.5, as in the module)
        "fusion_w": jnp.array([0.5], dtype=jnp.float32),
    }

    prepared = prepare_params(params)           # one-time offline folding
    out = hybrid_fusion(visual, audio, prepared)
    out = jax.block_until_ready(out)

    ref = _reference(visual, audio, params)
    assert out.shape == (B, O)
    assert jnp.allclose(out, ref, atol=1e-4, rtol=1e-4), "mismatch vs JAX reference"

    print("KERNEL_OK")
</pallas_src>

<mosaic_0001>
module attributes {stable_mosaic.version = 11 : i64} {
  func.func @hybrid_fusion_kernel(%arg0: i32, %arg1: memref<8x16xf32, #tpu.memory_space<vmem>>, %arg2: memref<8x24xf32, #tpu.memory_space<vmem>>, %arg3: memref<40x32xf32, #tpu.memory_space<vmem>>, %arg4: memref<1x32xf32, #tpu.memory_space<vmem>>, %arg5: memref<40x21xf32, #tpu.memory_space<vmem>>, %arg6: memref<32x21xf32, #tpu.memory_space<vmem>>, %arg7: memref<1x21xf32, #tpu.memory_space<vmem>>, %arg8: memref<8x21xf32, #tpu.memory_space<vmem>>) attributes {dimension_semantics = [#tpu.dimension_semantics<parallel>], iteration_bounds = array<i64: 1>, scalar_prefetch = 0 : i64, scratch_operands = 0 : i64, tpu.core_type = #tpu.core_type<tc>, window_params = [{transform_indices = @transform_0, window_bounds = array<i64: 8, 16>}, {transform_indices = @transform_1, window_bounds = array<i64: 8, 24>}, {pipeline_mode = #tpu.pipeline_mode<synchronous>, transform_indices = @transform_2, window_bounds = array<i64: 40, 32>}, {pipeline_mode = #tpu.pipeline_mode<synchronous>, transform_indices = @transform_3, window_bounds = array<i64: 1, 32>}, {pipeline_mode = #tpu.pipeline_mode<synchronous>, transform_indices = @transform_4, window_bounds = array<i64: 40, 21>}, {pipeline_mode = #tpu.pipeline_mode<synchronous>, transform_indices = @transform_5, window_bounds = array<i64: 32, 21>}, {pipeline_mode = #tpu.pipeline_mode<synchronous>, transform_indices = @transform_6, window_bounds = array<i64: 1, 21>}, {transform_indices = @transform_7, window_bounds = array<i64: 8, 21>}]} {
    %c0 = arith.constant 0 : index
    %c0_0 = arith.constant 0 : index
    %0 = vector.load %arg1[%c0, %c0_0] : memref<8x16xf32, #tpu.memory_space<vmem>>, vector<8x16xf32>
    %c0_1 = arith.constant 0 : index
    %c0_2 = arith.constant 0 : index
    %1 = vector.load %arg2[%c0_1, %c0_2] : memref<8x24xf32, #tpu.memory_space<vmem>>, vector<8x24xf32>
    %c0_3 = arith.constant 0 : index
    %c0_4 = arith.constant 0 : index
    %2 = vector.load %arg3[%c0_3, %c0_4] : memref<40x32xf32, #tpu.memory_space<vmem>>, vector<16x32xf32>
    %cst = arith.constant dense<0.000000e+00> : vector<8x32xf32>
    %3 = tpu.matmul %0, %2, %cst {dimension_numbers = #tpu.dot_dimension_numbers<[1], [0], [0], [1], [0, 0, 1, 1], [], []>} : vector<8x16xf32>, vector<16x32xf32>, vector<8x32xf32> -> vector<8x32xf32>
    %c16 = arith.constant 16 : index
    %c0_5 = arith.constant 0 : index
    %4 = vector.load %arg3[%c16, %c0_5] : memref<40x32xf32, #tpu.memory_space<vmem>>, vector<24x32xf32>
    %cst_6 = arith.constant dense<0.000000e+00> : vector<8x32xf32>
    %5 = tpu.matmul %1, %4, %cst_6 {dimension_numbers = #tpu.dot_dimension_numbers<[1], [0], [0], [1], [0, 0, 1, 1], [], []>} : vector<8x24xf32>, vector<24x32xf32>, vector<8x32xf32> -> vector<8x32xf32>
    %6 = arith.addf %3, %5 : vector<8x32xf32>
    %c0_7 = arith.constant 0 : index
    %c0_8 = arith.constant 0 : index
    %7 = vector.load %arg4[%c0_7, %c0_8] : memref<1x32xf32, #tpu.memory_space<vmem>>, vector<1x32xf32>
    %8 = vector.broadcast %7 : vector<1x32xf32> to vector<8x32xf32>
    %9 = arith.addf %6, %8 : vector<8x32xf32>
    %cst_9 = arith.constant 0.000000e+00 : f32
    %10 = vector.broadcast %cst_9 : f32 to vector<8x32xf32>
    %11 = arith.maximumf %9, %10 : vector<8x32xf32>
    %c0_10 = arith.constant 0 : index
    %c0_11 = arith.constant 0 : index
    %12 = vector.load %arg5[%c0_10, %c0_11] : memref<40x21xf32, #tpu.memory_space<vmem>>, vector<16x21xf32>
    %cst_12 = arith.constant dense<0.000000e+00> : vector<8x21xf32>
    %13 = tpu.matmul %0, %12, %cst_12 {dimension_numbers = #tpu.dot_dimension_numbers<[1], [0], [0], [1], [0, 0, 1, 1], [], []>} : vector<8x16xf32>, vector<16x21xf32>, vector<8x21xf32> -> vector<8x21xf32>
    %c16_13 = arith.constant 16 : index
    %c0_14 = arith.constant 0 : index
    %14 = vector.load %arg5[%c16_13, %c0_14] : memref<40x21xf32, #tpu.memory_space<vmem>>, vector<24x21xf32>
    %cst_15 = arith.constant dense<0.000000e+00> : vector<8x21xf32>
    %15 = tpu.matmul %1, %14, %cst_15 {dimension_numbers = #tpu.dot_dimension_numbers<[1], [0], [0], [1], [0, 0, 1, 1], [], []>} : vector<8x24xf32>, vector<24x21xf32>, vector<8x21xf32> -> vector<8x21xf32>
    %16 = arith.addf %13, %15 : vector<8x21xf32>
    %c0_16 = arith.constant 0 : index
    %c0_17 = arith.constant 0 : index
    %17 = vector.load %arg6[%c0_16, %c0_17] : memref<32x21xf32, #tpu.memory_space<vmem>>, vector<32x21xf32>
    %cst_18 = arith.constant dense<0.000000e+00> : vector<8x21xf32>
    %18 = tpu.matmul %11, %17, %cst_18 {dimension_numbers = #tpu.dot_dimension_numbers<[1], [0], [0], [1], [0, 0, 1, 1], [], []>} : vector<8x32xf32>, vector<32x21xf32>, vector<8x21xf32> -> vector<8x21xf32>
    %19 = arith.addf %18, %16 : vector<8x21xf32>
    %c0_19 = arith.constant 0 : index
    %c0_20 = arith.constant 0 : index
    %20 = vector.load %arg7[%c0_19, %c0_20] : memref<1x21xf32, #tpu.memory_space<vmem>>, vector<1x21xf32>
    %21 = vector.broadcast %20 : vector<1x21xf32> to vector<8x21xf32>
    %22 = arith.addf %19, %21 : vector<8x21xf32>
    %c0_21 = arith.constant 0 : index
    %c0_22 = arith.constant 0 : index
    %23 = vector.load %arg8[%c0_21, %c0_22] : memref<8x21xf32, #tpu.memory_space<vmem>>, vector<8x21xf32>
    tpu.vector_store %arg8[%c0_21, %c0_22], %22 {strides = array<i32>} : memref<8x21xf32, #tpu.memory_space<vmem>>, vector<8x21xf32>,
    return
  }
  func.func @transform_0(%arg0: i32) -> (i32, i32) {
    %c0_i32 = arith.constant 0 : i32
    %c0_i32_0 = arith.constant 0 : i32
    return %arg0, %c0_i32 : i32, i32
  }
  func.func @transform_1(%arg0: i32) -> (i32, i32) {
    %c0_i32 = arith.constant 0 : i32
    %c0_i32_0 = arith.constant 0 : i32
    return %arg0, %c0_i32 : i32, i32
  }
  func.func @transform_2(%arg0: i32) -> (i32, i32) {
    %c0_i32 = arith.constant 0 : i32
    %c0_i32_0 = arith.constant 0 : i32
    %c0_i32_1 = arith.constant 0 : i32
    return %c0_i32, %c0_i32_0 : i32, i32
  }
  func.func @transform_3(%arg0: i32) -> (i32, i32) {
    %c0_i32 = arith.constant 0 : i32
    %c0_i32_0 = arith.constant 0 : i32
    %c0_i32_1 = arith.constant 0 : i32
    return %c0_i32, %c0_i32_0 : i32, i32
  }
  func.func @transform_4(%arg0: i32) -> (i32, i32) {
    %c0_i32 = arith.constant 0 : i32
    %c0_i32_0 = arith.constant 0 : i32
    %c0_i32_1 = arith.constant 0 : i32
    return %c0_i32, %c0_i32_0 : i32, i32
  }
  func.func @transform_5(%arg0: i32) -> (i32, i32) {
    %c0_i32 = arith.constant 0 : i32
    %c0_i32_0 = arith.constant 0 : i32
    %c0_i32_1 = arith.constant 0 : i32
    return %c0_i32, %c0_i32_0 : i32, i32
  }
  func.func @transform_6(%arg0: i32) -> (i32, i32) {
    %c0_i32 = arith.constant 0 : i32
    %c0_i32_0 = arith.constant 0 : i32
    %c0_i32_1 = arith.constant 0 : i32
    return %c0_i32, %c0_i32_0 : i32, i32
  }
  func.func @transform_7(%arg0: i32) -> (i32, i32) {
    %c0_i32 = arith.constant 0 : i32
    %c0_i32_0 = arith.constant 0 : i32
    return %arg0, %c0_i32 : i32, i32
  }
}

</mosaic_0001>

<bundles_post_ra>
// kernel: tpu_custom_call.1
= control target key start
LH: loop header
LB: loop body
LE: loop exit
PB: predicated region body
PF: predicated region fallthrough
CT: control target
= control target key end

     0   :  { %v553_v3 = vmov 0.0|0.0   ;;  %vm554_vm0 = vmmov 0   ;;  %v555_v7 = vmov 0.0   ;;  %vm108_vm1 = vcmask 130048   ;;  %s670_s0 = inlined_call_operand.vmem [shape: f32[8,16], index: 0, kind: input, shape index: {}]   ;;  %s671_s1 = inlined_call_operand.vmem [shape: f32[8,24], index: 1, kind: input, shape index: {}]   ;;  %s672_s2 = inlined_call_operand.vmem [shape: f32[40,32], index: 2, kind: input, shape index: {}]   ;;  %s673_s3 = inlined_call_operand.vmem [shape: f32[1,32], index: 3, kind: input, shape index: {}]   ;;  %s674_s4 = inlined_call_operand.vmem [shape: f32[40,21], index: 4, kind: input, shape index: {}]   ;;  %s675_s5 = inlined_call_operand.vmem [shape: f32[32,21], index: 5, kind: input, shape index: {}]   ;;  %s676_s6 = inlined_call_operand.vmem [shape: f32[1,21], index: 6, kind: input, shape index: {}]   ;;  %s677_s7 = inlined_call_operand.hbm [shape: f32[8,21], index: 7, kind: output, shape index: {}]  }
   0x1   :  { %v31_v0 = vld [vmem:[%s672_s2 + $0x10] sm:$0xff]  ;;  %v32_v1 = vld [vmem:[%s672_s2 + $0x18] sm:$0xff]  ;;  %v29_v2 = vld [vmem:[%s672_s2] sm:$0xff]  ;;  %507 = vmatprep.subr.bf16.mxu0 %v553_v3  ;;  %510 = vmatprep.subr.bf16.mxu1 %v553_v3 }
   0x2   :  { %v508_v4 = vpack.c.bf16 %v32_v1, %v31_v0  ;;  %v30_v5 = vld [vmem:[%s672_s2 + $0x8] sm:$0xff]  ;;  %477 = vmatprep.mubr.msk.f32.mxu1 %vm554_vm0, %v555_v7  ;;  %470 = vmatprep.mubr.msk.f32.mxu0 %vm554_vm0, %v555_v7  ;;  %v193_v8 = vld [vmem:[%s674_s4 + $0x10] sm:$0xff]  ;;  %v194_v9 = vld [vmem:[%s674_s4 + $0x18] sm:$0xff] }
   0x3   :  { %v511_v6 = vpack.c.bf16 %v30_v5, %v29_v2  ;;  %v33_v10 = vld [vmem:[%s672_s2 + $0x20] sm:$0xff]  ;;  %v514_v12 = vpack.c.bf16 %v194_v9, %v193_v8 }
   0x4   :  { %509 = vmatpush3.bf16.msra.mxu0 %v508_v4  ;;  %v27_v11 = vld [vmem:[%s670_s0] sm:$0xff] }
   0x5   :  { %512 = vmatpush3.bf16.msra.mxu1 %v511_v6  ;;  %468 = vmatprep.subr.mxu0 %v555_v7 }
   0x6   :  { %12 = vsyncpa [#allocation3], 0  ;;  %v28_v13 = vld [vmem:[%s671_s1] sm:$0xff]  ;;  %vm34_vm2 = vcmask 195584   ;;  %513 = vmatprep.subr.bf16.mxu1 %v553_v3  ;;  %v192_v15 = vld [vmem:[%s674_s4 + $0x8] sm:$0xff]  ;;  %vm340_vm3 = vcmask 261120  }
   0x7   :  { %v191_v14 = vld [vmem:[%s674_s4] sm:$0xff]  ;;  %v337_v19 = vld [vmem:[%s675_s5 + $0x8] sm:$0xff]  ;;  %v338_v21 = vld [vmem:[%s675_s5 + $0x10] sm:$0xff]  ;;  %s556_s9 = smov [#allocation2]   ;;  %vm422_vm4 = vcmask 171008  }
   0x8   :  { %469 = vmatpush3.msra.mxu0 %v33_v10  ;;  %478 = vmatmul.mubr.msk.f32.vlgmr.msra.gmra.mrb[0].mxu1 %vm108_vm1, %v27_v11  ;;  %v195_v16 = vld [vmem:[%s674_s4 + $0x20] sm:$0xff]  ;;  %v517_v17 = vpack.c.bf16 %v192_v15, %v191_v14  ;;  %v339_v22 = vld [vmem:[%s675_s5 + $0x18] sm:$0xff]  ;;  %s430_s10 = sshll.u32 %s556_s9, 4  ;;  %s431_s10 = int_to_ptr.vmem [resolvable:$true] %s430_s10 }
   0x9   :  { %471 = vmatmul.mubr.msk.f32.vlgmr.msra.gmra.mrb[0].mxu0 %vm34_vm2, %v28_v13  ;;  %515 = vmatpush3.bf16.msra.mxu1 %v514_v12  ;;  %v336_v18 = vld [vmem:[%s675_s5] sm:$0xff]  ;;  %v523_v23 = vpack.c.bf16 %v339_v22, %v338_v21  ;;  %p534_p1 = scmp.lt.s32.totalorder %s431_s10, %s431_s10 }
   0xa   :  { %484 = vmatprep.subr.mxu1 %v555_v7  ;;  %486 = vmatprep.mubr.msk.f32.mxu1 %vm554_vm0, %v555_v7  ;;  %v520_v20 = vpack.c.bf16 %v337_v19, %v336_v18  ;;  %v440_v26 = vld [vmem:[%s673_s3] ss:$0 sm:$0xff]  ;;  %s529_s3 = scalar_lea.vmem %s431_s10, 128 }
   0xb   :  { %519 = vmatprep.subr.bf16.mxu0 %v553_v3  ;;  %504 = vmatprep.mubr.msk.f32.mxu0 %vm554_vm0, %v555_v7  ;;  %v444_v38 = vld [vmem:[%s676_s6] ss:$0 sm:$0xff]  ;;  %p530_p0 = scmp.ne.s32.totalorder %s431_s10, %s529_s3  ;;  %p535_p2 = scmp.lt.s32.totalorder %s529_s3, %s529_s3 }
   0xc   :  { %521 = vmatpush3.bf16.msra.mxu0 %v520_v20 }
   0xd   :  { %485 = vmatpush3.msra.mxu1 %v195_v16  ;;  %522 = vmatprep.subr.bf16.mxu0 %v553_v3  ;;  %p536_p3 = por %p535_p2, %p534_p1 }
   0xe   :  { %487 = vmatmul.mubr.msk.f32.vlgmr.msra.gmra.mrb[2].mxu1 %vm34_vm2, %v28_v13  ;;  %516 = vmatprep.subr.bf16.mxu1 %v553_v3 }
   0xf   :  { %518 = vmatpush3.bf16.msra.mxu1 %v517_v17  ;;  %493 = vmatprep.mubr.msk.f32.mxu1 %vm554_vm0, %v555_v7  ;;  %p537_p4 = pnand %p536_p3, %p530_p0 }
  0x10   :  { %524 = vmatpush3.bf16.msra.mxu0 %v523_v23 }
  0x12   :  { %494 = vmatmul.mubr.msk.f32.vlgmr.msra.gmra.mrb[4].mxu1 %vm108_vm1, %v27_v11 }
  0xdb   :  { %v178_v24 = vpop.f32.mrb[0].mxu1 }
  0xdc   :  { %v104_v25 = vpop.f32.mrb[0].mxu0  ;;  %v479_v27 = vpop.f32.mrb[1].mxu1 }
  0xdd   :  { %v179_v28 = vadd.f32 %v178_v24, %v104_v25  ;;  %v472_v29 = vpop.f32.mrb[1].mxu0 }
  0xdf   :  { %v189_v30 = vadd.f32 %v440_v26, %v179_v28 }
  0xe1   :  { %v190_v31 = vmax.f32 %v189_v30, 0.0  ;;  %v262_v32 = vpop.f32.mrb[2].mxu1 }
  0xe2   :  { %v488_v33 = vpop.f32.mrb[3].mxu1 }
  0xe3   :  { %505 = vmatmul.mubr.msk.f32.vlgmr.msra.gmra.mrb[2].mxu0 %vm340_vm3, %v190_v31 }
  0xe5   :  { %v332_v34 = vpop.f32.mrb[4].mxu1 }
  0xe6   :  { %v333_v35 = vadd.f32 %v332_v34, %v262_v32  ;;  %v495_v36 = vpop.f32.mrb[5].mxu1 }
 0x1b6   :  { %v410_v37 = vpop.f32.mrb[2].mxu0 }
 0x1b7   :  { %v411_v39 = vadd.f32 %v410_v37, %v333_v35  ;;  %v506_v40 = vpop.f32.mrb[3].mxu0 }
 0x1b9   :  { %v421_v41 = vadd.f32 %v444_v38, %v411_v39 }
 0x1bb   :  { %423 = vst.msk [vmem:[#allocation2] sm:$0xff] %vm422_vm4, %v421_v41 }
 0x1bc   :  { %540 = shalt.err (!%p537_p4)
}
 0x1bd   :  { %s541_s13 = scalar_lea.hbm %s677_s7, 128 }
 0x1be   :  { %p542_p5 = scmp.ne.s32.totalorder %s677_s7, %s541_s13  ;;  %p545_p6 = scmp.lt.u32.totalorder %s541_s13, %s677_s7 }
 0x1c0   :  { %p547_p7 = pnand %p545_p6, %p542_p5 }
 0x1c2   :  { %550 = shalt.err (!%p547_p7)
}
 0x1c3   :  { %433 = dma.vmem_to_hbm [thread:$0]  %s431_s10, 128, %s677_s7, [#allocation3]  }
 0x1c4   :  { %551 = dma.done.wait [#allocation3], 128  }
 0x1c5   :  { %552 = vsyncadd [#allocation3], 4294967168 }
 0x1c6   :  { %437 = vsyncpa [#allocation3], 1 }

</bundles_post_ra>
